<compile_context>
chip_gen: v7x
topology: tpu7x:2x2x1
jax: 0.10.0
libtpu: 0.0.40
codegen_flags: <defaults>
</compile_context>

<pallas_src>
import functools

import jax
import jax.numpy as jnp
import numpy as np
from jax.experimental import pallas as pl
from jax.experimental.pallas import tpu as pltpu

EPS_ADD = 0.1 ** 5  # the 1e-5 additive constant used by the module


def _use_int_pow(epsilon):
    """True if 1/epsilon is (numerically) a small positive integer."""
    inv = 1.0 / float(epsilon)
    n = int(round(inv))
    return (abs(inv - n) < 1e-9) and (1 <= n <= 16), n


def _int_power(v, n):
    """v ** n for small static integer n via repeated squaring (VPU only)."""
    result = None
    base = v
    while n > 0:
        if n & 1:
            result = base if result is None else result * base
        n >>= 1
        if n:
            base = base * base
    return result


def _inference_kernel(x_ref, w_ref, b_ref, out_ref, *, epsilon, n_rules,
                      n_classes):
    """One batch tile.

    x_ref   : VMEM (Bt, C*R) f32 -- rule firing strengths (natural layout)
    w_ref   : VMEM (1, C*R)  f32 -- weight[:, 0]
    b_ref   : VMEM (1, C)    f32 -- per-class bias
    out_ref : VMEM (Bt, C)   f32 -- logits (no activation in this module)
    """
    inv_eps = 1.0 / epsilon

    x = x_ref[...]                                    # (Bt, C*R)
    w = w_ref[...]                                    # (1, C*R)
    contrib = x * (w * w) + EPS_ADD                   # (Bt, C*R), > 0

    # contrib ** (1/eps): integer fast path on the VPU, general path via EUP.
    fast, n = _use_int_pow(epsilon)
    if fast:
        powered = _int_power(contrib, n)
    else:
        powered = jnp.exp(jnp.log(contrib) * inv_eps)

    # Per-class segmented reduction over the lane dim (static unrolled loop).
    for c in range(n_classes):
        seg = powered[:, c * n_rules:(c + 1) * n_rules]       # (Bt, R)
        s = jnp.sum(seg, axis=-1, keepdims=True) + EPS_ADD    # (Bt, 1)
        if abs(epsilon - 0.5) < 1e-12:
            t = jnp.sqrt(s)
        else:
            t = jnp.exp(jnp.log(s) * epsilon)
        out_ref[:, c:c + 1] = t + b_ref[:, c:c + 1]


def inference_layer(x, weight, bias, epsilon, *, n_rules, n_classes,
                    block_b=512):
    """JAX wrapper.

    x      : (B, n_rules * n_classes) float
    weight : (n_rules * n_classes, n_classes) float  (only column 0 is used)
    bias   : (n_classes,) float
    epsilon: static Python float (epsilon_training=False path)

    Returns out : (B, n_classes) float32
    """
    B, F = x.shape
    assert F == n_rules * n_classes, "x must have n_rules * n_classes columns"
    CR = n_rules * n_classes

    x = x.astype(jnp.float32)                               # no relayout
    w = weight[:, 0].reshape(1, CR).astype(jnp.float32)     # tiny
    b2 = bias.reshape(1, n_classes).astype(jnp.float32)     # tiny

    # Batch tile: multiple of 8 (sublane) unless it covers the full batch.
    if block_b >= B:
        bt = B
    else:
        bt = max(8, (block_b // 8) * 8)
    num_blocks = pl.cdiv(B, bt)   # ragged edge handled by Pallas (masked)

    # Advisory cost estimate for XLA's scheduler.
    fast, n_int = _use_int_pow(epsilon)
    elems = B * CR
    if fast:
        flops = elems * (3 + max(1, n_int.bit_length()))
        transcendentals = B * n_classes
    else:
        flops = elems * 5
        transcendentals = 2 * elems + 2 * B * n_classes
    bytes_accessed = 4 * (elems + CR + n_classes + B * n_classes)

    kernel = functools.partial(_inference_kernel, epsilon=float(epsilon),
                               n_rules=n_rules, n_classes=n_classes)

    out = pl.pallas_call(
        kernel,
        grid=(num_blocks,),
        in_specs=[
            pl.BlockSpec((bt, CR), lambda i: (i, 0)),          # x
            pl.BlockSpec((1, CR), lambda i: (0, 0)),           # weight col 0
            pl.BlockSpec((1, n_classes), lambda i: (0, 0)),    # bias
        ],
        out_specs=pl.BlockSpec((bt, n_classes), lambda i: (i, 0)),
        out_shape=jax.ShapeDtypeStruct((B, n_classes), jnp.float32),
        compiler_params=pltpu.CompilerParams(
            dimension_semantics=("parallel",)),
        cost_estimate=pl.CostEstimate(
            flops=flops,
            transcendentals=transcendentals,
            bytes_accessed=bytes_accessed),
    )(x, w, b2)

    return out


def _reference_numpy(x, weight, bias, epsilon, n_rules, n_classes):
    """Plain numpy port of the PyTorch forward, for verification."""
    x = np.asarray(x, np.float64)
    weight = np.asarray(weight, np.float64)
    bias = np.asarray(bias, np.float64)
    outs = []
    for i in range(n_classes):
        xp = x[:, n_rules * i:n_rules * (i + 1)]
        w2 = weight[n_rules * i:n_rules * (i + 1), 0] ** 2
        o = xp * w2[None, :] + EPS_ADD
        t = np.sum(o ** (1.0 / epsilon), axis=-1) + EPS_ADD
        outs.append(t ** epsilon)
    return (np.stack(outs, axis=-1) + bias).astype(np.float32)


if __name__ == "__main__":
    n_rules, n_classes = 128, 4

    key = jax.random.PRNGKey(0)
    kx1, kx2, kw = jax.random.split(key, 3)

    # Deterministic init matching reset_parameters():
    #   weight ~ U[1, 1.001], bias = -0.1
    weight = jax.random.uniform(
        kw, (n_rules * n_classes, n_classes), dtype=jnp.float32,
        minval=1.0, maxval=1.001)
    bias = jnp.full((n_classes,), -0.1, dtype=jnp.float32)

    # --- case 1: eps = 0.5 (integer 1/eps fast path), divisible batch ---
    batch1 = 64
    x1 = jax.random.uniform(kx1, (batch1, n_rules * n_classes),
                            dtype=jnp.float32)
    out1 = inference_layer(x1, weight, bias, 0.5,
                           n_rules=n_rules, n_classes=n_classes, block_b=32)
    jax.block_until_ready(out1)
    assert out1.shape == (batch1, n_classes)
    ref1 = _reference_numpy(np.asarray(x1), np.asarray(weight),
                            np.asarray(bias), 0.5, n_rules, n_classes)
    np.testing.assert_allclose(np.asarray(out1), ref1, rtol=1e-4, atol=1e-5)

    # --- case 2: eps = 0.3 (general exp/log path), ragged batch (masked edge) ---
    batch2 = 50
    x2 = jax.random.uniform(kx2, (batch2, n_rules * n_classes),
                            dtype=jnp.float32)
    out2 = inference_layer(x2, weight, bias, 0.3,
                           n_rules=n_rules, n_classes=n_classes, block_b=32)
    jax.block_until_ready(out2)
    assert out2.shape == (batch2, n_classes)
    ref2 = _reference_numpy(np.asarray(x2), np.asarray(weight),
                            np.asarray(bias), 0.3, n_rules, n_classes)
    np.testing.assert_allclose(np.asarray(out2), ref2, rtol=1e-3, atol=1e-5)

    print("KERNEL_OK")
</pallas_src>

<mosaic_0001>
module attributes {stable_mosaic.version = 11 : i64} {
  func.func @_inference_kernel(%arg0: i32, %arg1: memref<32x512xf32, #tpu.memory_space<vmem>>, %arg2: memref<1x512xf32, #tpu.memory_space<vmem>>, %arg3: memref<1x4xf32, #tpu.memory_space<vmem>>, %arg4: memref<32x4xf32, #tpu.memory_space<vmem>>) attributes {dimension_semantics = [#tpu.dimension_semantics<parallel>], iteration_bounds = array<i64: 2>, scalar_prefetch = 0 : i64, scratch_operands = 0 : i64, tpu.core_type = #tpu.core_type<tc>, window_params = [{transform_indices = @transform_0, window_bounds = array<i64: 32, 512>}, {pipeline_mode = #tpu.pipeline_mode<synchronous>, transform_indices = @transform_1, window_bounds = array<i64: 1, 512>}, {pipeline_mode = #tpu.pipeline_mode<synchronous>, transform_indices = @transform_2, window_bounds = array<i64: 1, 4>}, {transform_indices = @transform_3, window_bounds = array<i64: 32, 4>}]} {
    %c0 = arith.constant 0 : index
    %c0_0 = arith.constant 0 : index
    %0 = vector.load %arg1[%c0, %c0_0] : memref<32x512xf32, #tpu.memory_space<vmem>>, vector<32x512xf32>
    %c0_1 = arith.constant 0 : index
    %c0_2 = arith.constant 0 : index
    %1 = vector.load %arg2[%c0_1, %c0_2] : memref<1x512xf32, #tpu.memory_space<vmem>>, vector<1x512xf32>
    %2 = arith.mulf %1, %1 : vector<1x512xf32>
    %3 = vector.broadcast %2 : vector<1x512xf32> to vector<32x512xf32>
    %4 = arith.mulf %0, %3 : vector<32x512xf32>
    %cst = arith.constant 9.99999974E-6 : f32
    %5 = vector.broadcast %cst : f32 to vector<32x512xf32>
    %6 = arith.addf %4, %5 : vector<32x512xf32>
    %7 = arith.mulf %6, %6 : vector<32x512xf32>
    %8 = vector.extract_strided_slice %7 {offsets = [0, 0], sizes = [32, 128], strides = [1, 1]} : vector<32x512xf32> to vector<32x128xf32>
    %cst_3 = arith.constant dense<0.000000e+00> : vector<32xf32>
    %9 = vector.multi_reduction <add>, %8, %cst_3 [1] : vector<32x128xf32> to vector<32xf32>
    %10 = vector.shape_cast %9 : vector<32xf32> to vector<32x1xf32>
    %cst_4 = arith.constant 9.99999974E-6 : f32
    %11 = vector.broadcast %cst_4 : f32 to vector<32x1xf32>
    %12 = arith.addf %10, %11 : vector<32x1xf32>
    %13 = math.sqrt %12 : vector<32x1xf32>
    %c0_5 = arith.constant 0 : index
    %c0_6 = arith.constant 0 : index
    %14 = vector.load %arg3[%c0_5, %c0_6] : memref<1x4xf32, #tpu.memory_space<vmem>>, vector<1x1xf32>
    %15 = vector.broadcast %14 : vector<1x1xf32> to vector<32x1xf32>
    %16 = arith.addf %13, %15 : vector<32x1xf32>
    %c0_7 = arith.constant 0 : index
    %c0_8 = arith.constant 0 : index
    %17 = vector.load %arg4[%c0_7, %c0_8] : memref<32x4xf32, #tpu.memory_space<vmem>>, vector<32x1xf32>
    tpu.vector_store %arg4[%c0_7, %c0_8], %16 {strides = array<i32>} : memref<32x4xf32, #tpu.memory_space<vmem>>, vector<32x1xf32>,
    %18 = vector.extract_strided_slice %7 {offsets = [0, 128], sizes = [32, 128], strides = [1, 1]} : vector<32x512xf32> to vector<32x128xf32>
    %cst_9 = arith.constant dense<0.000000e+00> : vector<32xf32>
    %19 = vector.multi_reduction <add>, %18, %cst_9 [1] : vector<32x128xf32> to vector<32xf32>
    %20 = vector.shape_cast %19 : vector<32xf32> to vector<32x1xf32>
    %cst_10 = arith.constant 9.99999974E-6 : f32
    %21 = vector.broadcast %cst_10 : f32 to vector<32x1xf32>
    %22 = arith.addf %20, %21 : vector<32x1xf32>
    %23 = math.sqrt %22 : vector<32x1xf32>
    %c0_11 = arith.constant 0 : index
    %c1 = arith.constant 1 : index
    %24 = vector.load %arg3[%c0_11, %c1] : memref<1x4xf32, #tpu.memory_space<vmem>>, vector<1x1xf32>
    %25 = vector.broadcast %24 : vector<1x1xf32> to vector<32x1xf32>
    %26 = arith.addf %23, %25 : vector<32x1xf32>
    %c0_12 = arith.constant 0 : index
    %c1_13 = arith.constant 1 : index
    %27 = vector.load %arg4[%c0_12, %c1_13] : memref<32x4xf32, #tpu.memory_space<vmem>>, vector<32x1xf32>
    tpu.vector_store %arg4[%c0_12, %c1_13], %26 {strides = array<i32>} : memref<32x4xf32, #tpu.memory_space<vmem>>, vector<32x1xf32>,
    %28 = vector.extract_strided_slice %7 {offsets = [0, 256], sizes = [32, 128], strides = [1, 1]} : vector<32x512xf32> to vector<32x128xf32>
    %cst_14 = arith.constant dense<0.000000e+00> : vector<32xf32>
    %29 = vector.multi_reduction <add>, %28, %cst_14 [1] : vector<32x128xf32> to vector<32xf32>
    %30 = vector.shape_cast %29 : vector<32xf32> to vector<32x1xf32>
    %cst_15 = arith.constant 9.99999974E-6 : f32
    %31 = vector.broadcast %cst_15 : f32 to vector<32x1xf32>
    %32 = arith.addf %30, %31 : vector<32x1xf32>
    %33 = math.sqrt %32 : vector<32x1xf32>
    %c0_16 = arith.constant 0 : index
    %c2 = arith.constant 2 : index
    %34 = vector.load %arg3[%c0_16, %c2] : memref<1x4xf32, #tpu.memory_space<vmem>>, vector<1x1xf32>
    %35 = vector.broadcast %34 : vector<1x1xf32> to vector<32x1xf32>
    %36 = arith.addf %33, %35 : vector<32x1xf32>
    %c0_17 = arith.constant 0 : index
    %c2_18 = arith.constant 2 : index
    %37 = vector.load %arg4[%c0_17, %c2_18] : memref<32x4xf32, #tpu.memory_space<vmem>>, vector<32x1xf32>
    tpu.vector_store %arg4[%c0_17, %c2_18], %36 {strides = array<i32>} : memref<32x4xf32, #tpu.memory_space<vmem>>, vector<32x1xf32>,
    %38 = vector.extract_strided_slice %7 {offsets = [0, 384], sizes = [32, 128], strides = [1, 1]} : vector<32x512xf32> to vector<32x128xf32>
    %cst_19 = arith.constant dense<0.000000e+00> : vector<32xf32>
    %39 = vector.multi_reduction <add>, %38, %cst_19 [1] : vector<32x128xf32> to vector<32xf32>
    %40 = vector.shape_cast %39 : vector<32xf32> to vector<32x1xf32>
    %cst_20 = arith.constant 9.99999974E-6 : f32
    %41 = vector.broadcast %cst_20 : f32 to vector<32x1xf32>
    %42 = arith.addf %40, %41 : vector<32x1xf32>
    %43 = math.sqrt %42 : vector<32x1xf32>
    %c0_21 = arith.constant 0 : index
    %c3 = arith.constant 3 : index
    %44 = vector.load %arg3[%c0_21, %c3] : memref<1x4xf32, #tpu.memory_space<vmem>>, vector<1x1xf32>
    %45 = vector.broadcast %44 : vector<1x1xf32> to vector<32x1xf32>
    %46 = arith.addf %43, %45 : vector<32x1xf32>
    %c0_22 = arith.constant 0 : index
    %c3_23 = arith.constant 3 : index
    %47 = vector.load %arg4[%c0_22, %c3_23] : memref<32x4xf32, #tpu.memory_space<vmem>>, vector<32x1xf32>
    tpu.vector_store %arg4[%c0_22, %c3_23], %46 {strides = array<i32>} : memref<32x4xf32, #tpu.memory_space<vmem>>, vector<32x1xf32>,
    return
  }
  func.func @transform_0(%arg0: i32) -> (i32, i32) {
    %c0_i32 = arith.constant 0 : i32
    %c0_i32_0 = arith.constant 0 : i32
    return %arg0, %c0_i32 : i32, i32
  }
  func.func @transform_1(%arg0: i32) -> (i32, i32) {
    %c0_i32 = arith.constant 0 : i32
    %c0_i32_0 = arith.constant 0 : i32
    %c0_i32_1 = arith.constant 0 : i32
    return %c0_i32, %c0_i32_0 : i32, i32
  }
  func.func @transform_2(%arg0: i32) -> (i32, i32) {
    %c0_i32 = arith.constant 0 : i32
    %c0_i32_0 = arith.constant 0 : i32
    %c0_i32_1 = arith.constant 0 : i32
    return %c0_i32, %c0_i32_0 : i32, i32
  }
  func.func @transform_3(%arg0: i32) -> (i32, i32) {
    %c0_i32 = arith.constant 0 : i32
    %c0_i32_0 = arith.constant 0 : i32
    return %arg0, %c0_i32 : i32, i32
  }
}

</mosaic_0001>

<bundles_post_ra>
// kernel: tpu_custom_call.1
= control target key start
LH: loop header
LB: loop body
LE: loop exit
PB: predicated region body
PF: predicated region fallthrough
CT: control target
= control target key end

     0   :  { %8 = vsyncpa [#allocation3], 0  ;;  %s1187_s0 = inlined_call_operand.hbm [shape: f32[64,512], index: 0, kind: input, shape index: {}]   ;;  %s1188_s1 = inlined_call_operand.hbm [shape: f32[1,512], index: 1, kind: input, shape index: {}]   ;;  %s1189_s2 = inlined_call_operand.vmem [shape: f32[1,4], index: 2, kind: input, shape index: {}]   ;;  %s1190_s3 = inlined_call_operand.vmem [shape: f32[64,4], index: 3, kind: output, shape index: {}]  }
   0x1   :  { %10 = vsyncpa [#allocation3 + $0x1], 0 }
   0x2   :  { %11 = vsyncpa [#allocation5], 0  ;;  %s823_s12 = smov 0   ;;  %s825_s13 = smov 0  }
   0x3   :  { %s827_s14 = smov 0   ;;  %s829_s15 = smov 0  }
   0x4 LB: > { %s595_s16 = sadd.s32 4294967295, %s797_s15   ;;  %s843_s17 = sadd.s32 1, %s797_s15   ;;  %s797_s15 = sphi %s829_s15, %s1209_s15   ;;  %s793_s14 = sphi %s827_s14, %s1208_s14   ;;  %s789_s13 = sphi %s825_s13, %s1207_s13   ;;  %s785_s12 = sphi %s823_s12, %s1206_s12  }
   0x5   : > { %s21_s18 = ssub.s32 %s797_s15, %s843_s17  ;;  %s24_s19 = sadd.s32 1, %s793_s14 }
   0x6   : > { %p22_p0 = scmp.eq.s32.totalorder %s21_s18, 0  ;;  %p31_p1 = scmp.ne.s32.totalorder %s793_s14, %s789_s13 }
   0x7   : > { %p32_p2 = scmp.eq.s32.totalorder %s797_s15, 0  ;;  %p37_p3 = scmp.ne.s32.totalorder %s789_s13, %s785_s12 }
   0x8   : > { %s853_s20 = scalar_select %p22_p0, %s793_s14, %s24_s19  }
   0x9   : > { %p855_p4 = por %p32_p2, %p31_p1  ;;  %p861_p5 = scmp.eq.s32.totalorder %s595_s16, 0 }
   0xa   : > { %p597_p6 = scmp.ge.s32.totalorder %s797_s15, 1  ;;  %p116_p7 = scmp.lt.s32.totalorder %s797_s15, 3 }
   0xb   : > { %s1197_s22 = scalar_select %p861_p5, 1, 0 }
   0xc   : > { %p869_p8 = por %p861_p5, %p37_p3  ;;  %p873_p9 = pnand %p597_p6, %p116_p7 }
   0xd   : > { %s799_s25 = smov [#allocation4]   ;;  %p632_p11 = scmp.lt.s32.totalorder %s797_s15, 2 }
   0xe   : > { %s1198_s23 = scalar_select %p869_p8, 1, 0 }
   0xf   : > { %s1199_s24 = scalar_select %p873_p9, 1, 0 }
  0x10   : > { %s129_s26 = sshll.u32 %s799_s25, 4  ;;  %p623_p10 = pneg %p873_p9  ;;  %s130_s26 = int_to_ptr.vmem [resolvable:$true] %s129_s26 }
  0x11   : > { %s143_s27 = sand.u32 1, %s793_s14   ;;  %p889_p13 = pnand %p632_p11, %p855_p4 }
  0x12   : > { %p883_p12 = pnand %p623_p10, %p861_p5  ;;  %s600_s30 = sshll.u32 %s143_s27, 7 }
  0x13   : > { %s1201_s29 = scalar_select %p889_p13, 1, 0 }
  0x14   : > { %s701_s6 = scalar_lea.hbm %s1188_s1, 64  ;;  %p703_p1 = pneg %p883_p12 }
  0x15   : > { %p702_p0 = scmp.ne.s32.totalorder %s1188_s1, %s701_s6  ;;  %p708_p4 = scmp.lt.u32.totalorder %s701_s6, %s1188_s1 }
  0x17   : > { %p704_p2 = pnand %p703_p1, %p702_p0 }
  0x19   : > { %p705_p3 = pneg %p704_p2 }
  0x1b   : > { %p710_p6 = pnand %p708_p4, %p705_p3 }
  0x1d   : > { %713 = shalt.err (!%p710_p6)
}
  0x1e   : > { %s714_s11 = scalar_lea.vmem %s130_s26, 64  ;;  %p722_p5 = scmp.lt.s32.totalorder %s130_s26, %s130_s26 }
  0x1f   : > { %p715_p7 = scmp.ne.s32.totalorder %s130_s26, %s714_s11  ;;  %p723_p8 = scmp.lt.s32.totalorder %s714_s11, %s714_s11 }
  0x21   : > { %p717_p10 = pnand %p715_p7, %p703_p1  ;;  %p724_p9 = por %p723_p8, %p722_p5 }
  0x23   : > { %p718_p11 = pneg %p717_p10 }
  0x25   : > { %p725_p13 = pnand %p724_p9, %p718_p11 }
  0x27   : > { %728 = shalt.err (!%p725_p13)
}
  0x28   : > { %626 = dma.hbm_to_vmem [thread:$0]  (!%p883_p12), %s1188_s1, 64, %s130_s26, [#allocation5]  }
  0x29   : > { %s616_s19 = sshll.u32 %s797_s15, 11  ;;  %s147_s5 = scalar_lea.vmem [#allocation2], %s600_s30 }
  0x2a   : > { %s913_s4 = scalar_lea.hbm %s1187_s0, %s616_s19  ;;  %s155_s6 = sshll.u32 %s147_s5, 4  ;;  %s915_s6 = int_to_ptr.vmem [resolvable:$true] %s155_s6 }
  0x2b   : > { %s917_s28 = scalar_lea.sflag [#allocation3], %s143_s27  ;;  %s729_s7 = scalar_lea.hbm %s913_s4, 2048 }
  0x2c   : > { %p730_p5 = scmp.ne.s32.totalorder %s913_s4, %s729_s7  ;;  %p1202_p8 = scmp.ne.s32.totalorder %s1201_s29, 0 }
  0x2d   : > { %s734_s9 = scalar_lea.hbm %s1187_s0, 4096  ;;  %p735_p0 = scmp.lt.u32.totalorder %s913_s4, %s1187_s0 }
  0x2e   : > { %p731_p9 = pneg %p1202_p8  ;;  %p736_p1 = scmp.lt.u32.totalorder %s734_s9, %s729_s7 }
  0x2f   : > { %p738_p3 = scmp.lt.u32.totalorder %s729_s7, %s913_s4 }
  0x30   : > { %p732_p12 = pnand %p731_p9, %p730_p5  ;;  %p737_p2 = por %p736_p1, %p735_p0 }
  0x32   : > { %p733_p13 = pneg %p732_p12  ;;  %p739_p4 = por %p738_p3, %p737_p2 }
  0x34   : > { %p740_p6 = pnand %p739_p4, %p733_p13 }
  0x36   : > { %743 = shalt.err (!%p740_p6)
}
  0x37   : > { %s744_s27 = scalar_lea.vmem %s915_s6, 2048  ;;  %s800_s30 = smov [#allocation2]  }
  0x38   : > { %p745_p7 = scmp.ne.s32.totalorder %s915_s6, %s744_s27  ;;  %s749_s12 = sshll.u32 %s800_s30, 4  ;;  %s750_s12 = int_to_ptr.vmem [resolvable:$false] %s749_s12 }
  0x39   : > { %s751_s18 = scalar_lea.vmem %s750_s12, 4096  ;;  %p752_p5 = scmp.lt.s32.totalorder %s915_s6, %s750_s12 }
  0x3a   : > { %p747_p10 = pnand %p745_p7, %p731_p9  ;;  %p753_p12 = scmp.lt.s32.totalorder %s751_s18, %s744_s27 }
  0x3c   : > { %p748_p11 = pneg %p747_p10  ;;  %p754_p0 = por %p753_p12, %p752_p5 }
  0x3e   : > { %p755_p1 = pnand %p754_p0, %p748_p11 }
  0x40   : > { %758 = shalt.err (!%p755_p1)
}
  0x41   : > { %s801_s19 = smov 512   ;;  %s802_s21 = smov 32  }
  0x42   : > { %630 = dma.hbm_to_vmem [thread:$0]  (!%p1202_p8), %s913_s4, 2048, %s915_s6, %s917_s28, %s801_s19, %s801_s19, %s802_s21  }
  0x43   : > { %p1203_p9 = scmp.ne.s32.totalorder %s1199_s24, 0 }
  0x44   : > { %s169_s25 = sand.u32 (!%p1203_p9), 1, %s789_s13   ;;  %p1204_p13 = scmp.ne.s32.totalorder (!%p1203_p9), %s1198_s23, 0 }
  0x45   : > { %167 = sbr.rel (%p1203_p9) target bundleno = 285 (0x11d), region = 32  ;;  %s605_s5 = sshll.u32 (!%p1203_p9), %s169_s25, 7 }
  0x46   : > { %s170_s7 = scalar_lea.sflag (!%p1203_p9), [#allocation3], %s169_s25  ;;  %s948_s26 = scalar_lea.vmem (!%p1203_p9), [#allocation2], %s605_s5 }
  0x4c   : > { %776 = dma.done.wait (%p1204_p13), %s170_s7, 2048  }
  0x4d   : > { %778 = vsyncadd (%p1204_p13), %s170_s7, 4294965248  ;;  %p1205_p2 = scmp.ne.s32.totalorder %s1197_s22, 0 }
  0x4f   : > { %780 = dma.done.wait (%p1205_p2), [#allocation5], 64  }
  0x50   : > { %782 = vsyncadd (%p1205_p2), [#allocation5], 4294967232  ;;  %v226_v0 = vlaneseq  ;;  %v223_v4 = vld [vmem:[#allocation4] sm:$0xf]  ;;  %v212_v11 = vld [vmem:[%s948_s26 + $0x28] sm:$0xff]  ;;  %s607_s22 = sshll.u32 %s595_s16, 2 }
  0x51   : > { %v215_v5 = vld [vmem:[%s948_s26 + $0x40] sm:$0xff]  ;;  %v224_v6 = vmul.f32 %v223_v4, %v223_v4  ;;  %v208_v13 = vld [vmem:[%s948_s26 + $0x8] sm:$0xff]  ;;  %v213_v36 = vld [vmem:[%s948_s26 + $0x30] sm:$0xff]  ;;  %p202_p8 = scmp.lt.s32.totalorder %s607_s22, 7  ;;  %vm345_vm0 = vcmask 7168   ;;  %vm401_vm10 = vcmask 15368  }
  0x52   : > { %v227_v1 = vshrl.u32 %v226_v0, 7  ;;  %v207_v7 = vld [vmem:[%s948_s26] sm:$0xff]  ;;  %v220_v19 = vld [vmem:[%s948_s26 + $0x68] sm:$0xff]  ;;  %v209_v37 = vld [vmem:[%s948_s26 + $0x10] sm:$0xff] }
  0x53   : > { %v219_v8 = vld [vmem:[%s948_s26 + $0x60] sm:$0xff]  ;;  %v216_v20 = vld [vmem:[%s948_s26 + $0x48] sm:$0xff]  ;;  %v221_v45 = vld [vmem:[%s948_s26 + $0x70] sm:$0xff]  ;;  %s1211_s22 = smov (!%p202_p8, %s607_s22), 7 }
  0x54   : > { %v228_v2 = vsub.s32 0, %v227_v1  ;;  %v232_v3 = vsub.s32 1, %v227_v1  ;;  %v211_v9 = vld [vmem:[%s948_s26 + $0x20] sm:$0xff]  ;;  %v236_v21 = vsub.s32 2, %v227_v1  ;;  %v240_v40 = vsub.s32 3, %v227_v1  ;;  %v217_v46 = vld [vmem:[%s948_s26 + $0x50] sm:$0xff] }
  0x55   : > { %v214_v54 = vld [vmem:[%s948_s26 + $0x38] sm:$0xff]  ;;  %s608_s15 = sshll.u32 %s1211_s22, 3 }
  0x56   : > { %v229_v10 = vrot.slane %v224_v6, %v228_v2  ;;  %v233_v12 = vrot.slane %v224_v6, %v232_v3  ;;  %v237_v31 = vrot.slane %v224_v6, %v236_v21  ;;  %v241_v49 = vrot.slane %v224_v6, %v240_v40  ;;  %v210_v55 = vld [vmem:[%s948_s26 + $0x18] sm:$0xff]  ;;  %s1022_s4 = scalar_lea.vmem %s1190_s3, %s608_s15 }
  0x57   : > { %v222_v62 = vld [vmem:[%s948_s26 + $0x78] sm:$0xff] }
  0x58   : > { %v254_v14 = vmul.f32 %v229_v10, %v215_v5  ;;  %v246_v15 = vmul.f32 %v229_v10, %v207_v7  ;;  %v258_v16 = vmul.f32 %v229_v10, %v219_v8  ;;  %v250_v17 = vmul.f32 %v229_v10, %v211_v9  ;;  %v218_v63 = vld [vmem:[%s948_s26 + $0x58] sm:$0xff] }
  0x59   : > { %v251_v18 = vmul.f32 %v233_v12, %v212_v11  ;;  %v247_v25 = vmul.f32 %v233_v12, %v208_v13  ;;  %v259_v29 = vmul.f32 %v233_v12, %v220_v19  ;;  %v255_v30 = vmul.f32 %v233_v12, %v216_v20 }
  0x5a   : > { %v270_v22 = vadd.f32 1e-05, %v254_v14  ;;  %v262_v23 = vadd.f32 1e-05, %v246_v15  ;;  %v274_v24 = vadd.f32 1e-05, %v258_v16  ;;  %v252_v39 = vmul.f32 %v237_v31, %v213_v36 }
  0x5b   : > { %v266_v26 = vadd.f32 1e-05, %v250_v17  ;;  %v267_v34 = vadd.f32 1e-05, %v251_v18  ;;  %v263_v35 = vadd.f32 1e-05, %v247_v25  ;;  %v248_v44 = vmul.f32 %v237_v31, %v209_v37 }
  0x5c   : > { %v286_v27 = vmul.f32 %v270_v22, %v270_v22  ;;  %v278_v28 = vmul.f32 %v262_v23, %v262_v23  ;;  %v290_v32 = vmul.f32 %v274_v24, %v274_v24  ;;  %v275_v38 = vadd.f32 1e-05, %v259_v29 }
  0x5d   : > { %v282_v33 = vmul.f32 %v266_v26, %v266_v26  ;;  %v283_v41 = vmul.f32 %v267_v34, %v267_v34  ;;  %v279_v42 = vmul.f32 %v263_v35, %v263_v35  ;;  %v271_v43 = vadd.f32 1e-05, %v255_v30  ;;  %v1007_v34 = vld [vmem:[%s1189_s2] ss:$0 sm:$0xff] }
  0x5e   : > { %298 = vadd.xlane.f32.xlu1 %v286_v27  ;;  %294 = vadd.xlane.f32.xlu0 %v278_v28  ;;  %v291_v47 = vmul.f32 %v275_v38, %v275_v38  ;;  %v268_v48 = vadd.f32 1e-05, %v252_v39  ;;  %v264_v51 = vadd.f32 1e-05, %v248_v44  ;;  %v260_v52 = vmul.f32 %v237_v31, %v221_v45 }
  0x5f   : > { %v287_v50 = vmul.f32 %v271_v43, %v271_v43  ;;  %v256_v53 = vmul.f32 %v237_v31, %v217_v46  ;;  %v253_v56 = vmul.f32 %v241_v49, %v214_v54  ;;  %v249_v57 = vmul.f32 %v241_v49, %v210_v55 }
  0x60   : > { %v284_v58 = vmul.f32 %v268_v48, %v268_v48  ;;  %v280_v59 = vmul.f32 %v264_v51, %v264_v51  ;;  %v276_v60 = vadd.f32 1e-05, %v260_v52  ;;  %v261_v1 = vmul.f32 %v241_v49, %v222_v62 }
  0x61   : > { %v272_v61 = vadd.f32 1e-05, %v256_v53  ;;  %v269_v0 = vadd.f32 1e-05, %v253_v56  ;;  %v265_v4 = vadd.f32 1e-05, %v249_v57  ;;  %v257_v5 = vmul.f32 %v241_v49, %v218_v63 }
  0x62   : > { %300 = vadd.xlane.f32.xlu1 %v290_v32  ;;  %296 = vadd.xlane.f32.xlu0 %v282_v33  ;;  %v292_v2 = vmul.f32 %v276_v60, %v276_v60  ;;  %v277_v8 = vadd.f32 1e-05, %v261_v1 }
  0x63   : > { %v288_v3 = vmul.f32 %v272_v61, %v272_v61  ;;  %v285_v6 = vmul.f32 %v269_v0, %v269_v0  ;;  %v281_v7 = vmul.f32 %v265_v4, %v265_v4  ;;  %v273_v9 = vadd.f32 1e-05, %v257_v5 }
  0x64   : > { %v293_v10 = vmul.f32 %v277_v8, %v277_v8 }
  0x65   : > { %v289_v11 = vmul.f32 %v273_v9, %v273_v9 }
  0x66   : > { %352 = vadd.xlane.f32.xlu1 %v283_v41  ;;  %350 = vadd.xlane.f32.xlu0 %v279_v42 }
  0x6a   : > { %356 = vadd.xlane.f32.xlu1 %v291_v47  ;;  %354 = vadd.xlane.f32.xlu0 %v287_v50 }
  0x6e   : > { %408 = vadd.xlane.f32.xlu1 %v284_v58  ;;  %406 = vadd.xlane.f32.xlu0 %v280_v59 }
  0x72   : > { %412 = vadd.xlane.f32.xlu1 %v292_v2  ;;  %410 = vadd.xlane.f32.xlu0 %v288_v3 }
  0x76   : > { %464 = vadd.xlane.f32.xlu1 %v285_v6  ;;  %462 = vadd.xlane.f32.xlu0 %v281_v7 }
  0x7a   : > { %468 = vadd.xlane.f32.xlu1 %v293_v10  ;;  %466 = vadd.xlane.f32.xlu0 %v289_v11 }
  0xeb   : > { %v299_v12 = vpop.xlane.xlu1 %298  ;;  %v295_v13 = vpop.xlane.xlu0 %294 }
  0xec   : > { %v974_v14 = vadd.f32 1e-05, %v299_v12  ;;  %v302_v15 = vadd.f32 1e-05, %v295_v13 }
  0xee   : > { %669 = vrsqrt.f32 %v974_v14  ;;  %vm322_vm1 = vcmp.eq.f32.partialorder %v974_v14, inf  ;;  %vm324_vm2 = vcmp.eq.f32.partialorder %v974_v14, 0.0  ;;  %v325_v31 = vand.u32 2147483648, %v974_v14 }
  0xef   : > { %671 = vrsqrt.f32 %v302_v15  ;;  %v301_v16 = vpop.xlane.xlu1 %300  ;;  %v297_v17 = vpop.xlane.xlu0 %296  ;;  %vm308_vm3 = vcmp.eq.f32.partialorder %v302_v15, inf  ;;  %vm310_vm4 = vcmp.eq.f32.partialorder %v302_v15, 0.0  ;;  %v311_v33 = vand.u32 2147483648, %v302_v15 }
  0xf0   : > { %v979_v18 = vadd.f32 1e-05, %v301_v16  ;;  %v981_v19 = vadd.f32 1e-05, %v297_v17 }
  0xf2   : > { %673 = vrsqrt.f32 %v979_v18  ;;  %vm329_vm5 = vcmp.eq.f32.partialorder %v979_v18, inf  ;;  %vm331_vm6 = vcmp.eq.f32.partialorder %v979_v18, 0.0  ;;  %v332_v35 = vand.u32 2147483648, %v979_v18 }
  0xf3   : > { %675 = vrsqrt.f32 %v981_v19  ;;  %v353_v20 = vpop.xlane.xlu1 %352  ;;  %v351_v21 = vpop.xlane.xlu0 %350  ;;  %vm315_vm7 = vcmp.eq.f32.partialorder %v981_v19, inf  ;;  %vm317_vm8 = vcmp.eq.f32.partialorder %v981_v19, 0.0  ;;  %v318_v40 = vand.u32 2147483648, %v981_v19 }
  0xf4   : > { %v985_v22 = vadd.f32 1e-05, %v353_v20  ;;  %v987_v23 = vadd.f32 1e-05, %v351_v21 }
  0xf6   : > { %677 = vrsqrt.f32 %v985_v22  ;;  %vm371_vm9 = vcmp.eq.f32.partialorder %v985_v22, inf  ;;  %vm373_vm11 = vcmp.eq.f32.partialorder %v985_v22, 0.0  ;;  %v374_v50 = vand.u32 2147483648, %v985_v22 }
  0xf7   : > { %679 = vrsqrt.f32 %v987_v23  ;;  %v357_v24 = vpop.xlane.xlu1 %356  ;;  %v355_v25 = vpop.xlane.xlu0 %354  ;;  %vm364_vm12 = vcmp.eq.f32.partialorder %v987_v23, inf  ;;  %vm366_vm13 = vcmp.eq.f32.partialorder %v987_v23, 0.0  ;;  %v367_v60 = vand.u32 2147483648, %v987_v23 }
  0xf8   : > { %v670_v26 = vpop.eup %669  ;;  %v995_v27 = vadd.f32 1e-05, %v357_v24  ;;  %v997_v28 = vadd.f32 1e-05, %v355_v25 }
  0xf9   : > { %v672_v29 = vpop.eup %671  ;;  %v321_v30 = vmul.f32 %v670_v26, %v974_v14 }
  0xfa   : > { %v307_v32 = vmul.f32 %v672_v29, %v302_v15  ;;  %681 = vrsqrt.f32 %v995_v27  ;;  %vm385_vm14 = vcmp.eq.f32.partialorder %v995_v27, inf  ;;  %vm387_vm15 = vcmp.eq.f32.partialorder %v995_v27, 0.0 }
  0xfb   : > { %683 = vrsqrt.f32 %v997_v28  ;;  %v409_v36 = vpop.xlane.xlu1 %408  ;;  %v407_v37 = vpop.xlane.xlu0 %406  ;;  %v323_v42 = vsel %vm322_vm1, %v974_v14, %v321_v30  ;;  %vm378_vm1 = vcmp.eq.f32.partialorder %v997_v28, inf }
  0xfc   : > { %v674_v38 = vpop.eup %673  ;;  %v309_v39 = vsel %vm308_vm3, %v302_v15, %v307_v32  ;;  %v1026_v45 = vadd.f32 1e-05, %v409_v36  ;;  %v1031_v48 = vadd.f32 1e-05, %v407_v37  ;;  %v326_v54 = vsel %vm324_vm2, %v325_v31, %v323_v42 }
  0xfd   : > { %v676_v41 = vpop.eup %675  ;;  %v312_v43 = vsel %vm310_vm4, %v311_v33, %v309_v39  ;;  %v328_v44 = vmul.f32 %v674_v38, %v979_v18  ;;  %v343_v63 = vadd.f32 %v1007_v34, %v326_v54  ;;  %v388_v15 = vand.u32 2147483648, %v995_v27 }
  0xfe   : > { %v341_v46 = vadd.f32 %v1007_v34, %v312_v43  ;;  %v314_v47 = vmul.f32 %v676_v41, %v981_v19  ;;  %685 = vrsqrt.f32 %v1026_v45  ;;  %vm427_vm2 = vcmp.eq.f32.partialorder %v1026_v45, inf }
  0xff   : > { %v330_v49 = vsel %vm329_vm5, %v979_v18, %v328_v44  ;;  %v413_v51 = vpop.xlane.xlu1 %412  ;;  %v411_v52 = vpop.xlane.xlu0 %410  ;;  %687 = vrsqrt.f32 %v1031_v48  ;;  %348 = vst.msk [vmem:[%s1022_s4 + $0x10] sm:$0xff] %vm345_vm0, %v343_v63  ;;  %v381_v18 = vand.u32 2147483648, %v997_v28  ;;  %vm429_vm3 = vcmp.eq.f32.partialorder %v1026_v45, 0.0 }
 0x100   : > { %v678_v53 = vpop.eup %677  ;;  %346 = vst.msk [vmem:[%s1022_s4] sm:$0xff] %vm345_vm0, %v341_v46  ;;  %v316_v55 = vsel %vm315_vm7, %v981_v19, %v314_v47  ;;  %v333_v57 = vsel %vm331_vm6, %v332_v35, %v330_v49  ;;  %v1062_v1 = vadd.f32 1e-05, %v413_v51  ;;  %v1064_v2 = vadd.f32 1e-05, %v411_v52 }
 0x101   : > { %v680_v56 = vpop.eup %679  ;;  %v319_v58 = vsel %vm317_vm8, %v318_v40, %v316_v55  ;;  %v370_v59 = vmul.f32 %v678_v53, %v985_v22  ;;  %v344_v6 = vadd.f32 %v1007_v34, %v333_v57  ;;  %vm420_vm4 = vcmp.eq.f32.partialorder %v1031_v48, inf }
 0x102   : > { %v342_v61 = vadd.f32 %v1007_v34, %v319_v58  ;;  %v363_v62 = vmul.f32 %v680_v56, %v987_v23  ;;  %689 = vrsqrt.f32 %v1062_v1  ;;  %v423_v33 = vand.u32 2147483648, %v1031_v48 }
 0x103   : > { %v372_v0 = vsel %vm371_vm9, %v985_v22, %v370_v59  ;;  %v465_v3 = vpop.xlane.xlu1 %464  ;;  %v463_v4 = vpop.xlane.xlu0 %462  ;;  %349 = vst.msk [vmem:[%s1022_s4 + $0x18] sm:$0xff] %vm345_vm0, %v344_v6  ;;  %691 = vrsqrt.f32 %v1064_v2  ;;  %vm422_vm5 = vcmp.eq.f32.partialorder %v1031_v48, 0.0  ;;  %vm457_vm6 = vcmask 23568  }
 0x104   : > { %v682_v5 = vpop.eup %681  ;;  %347 = vst.msk [vmem:[%s1022_s4 + $0x8] sm:$0xff] %vm345_vm0, %v342_v61  ;;  %v375_v7 = vsel %vm373_vm11, %v374_v50, %v372_v0  ;;  %v365_v8 = vsel %vm364_vm12, %v987_v23, %v363_v62  ;;  %v1074_v9 = vadd.f32 1e-05, %v465_v3  ;;  %v1094_v19 = vadd.f32 1e-05, %v463_v4 }
 0x105   : > { %v684_v10 = vpop.eup %683  ;;  %v398_v11 = vadd.f32 %v1007_v34, %v375_v7  ;;  %v368_v12 = vsel %vm366_vm13, %v367_v60, %v365_v8  ;;  %v384_v13 = vmul.f32 %v682_v5, %v995_v27  ;;  %vm380_vm0 = vcmp.eq.f32.partialorder %v997_v28, 0.0 }
 0x106   : > { %v397_v14 = vadd.f32 %v1007_v34, %v368_v12  ;;  %v377_v16 = vmul.f32 %v684_v10, %v997_v28  ;;  %693 = vrsqrt.f32 %v1074_v9  ;;  %vm441_vm7 = vcmp.eq.f32.partialorder %v1062_v1, inf }
 0x107   : > { %v386_v17 = vsel %vm385_vm14, %v995_v27, %v384_v13  ;;  %403 = vst.msk [vmem:[%s1022_s4 + $0x8] sm:$0xff] %vm401_vm10, %v398_v11  ;;  %v469_v25 = vpop.xlane.xlu1 %468  ;;  %v467_v26 = vpop.xlane.xlu0 %466  ;;  %695 = vrsqrt.f32 %v1094_v19  ;;  %vm443_vm8 = vcmp.eq.f32.partialorder %v1062_v1, 0.0  ;;  %vm434_vm9 = vcmp.eq.f32.partialorder %v1064_v2, inf }
 0x108   : > { %v389_v20 = vsel %vm387_vm15, %v388_v15, %v386_v17  ;;  %402 = vst.msk [vmem:[%s1022_s4] sm:$0xff] %vm401_vm10, %v397_v14  ;;  %v379_v21 = vsel %vm378_vm1, %v997_v28, %v377_v16  ;;  %v686_v22 = vpop.eup %685  ;;  %v430_v28 = vand.u32 2147483648, %v1026_v45  ;;  %v473_v35 = vadd.f32 1e-05, %v469_v25 }
 0x109   : > { %v400_v23 = vadd.f32 %v1007_v34, %v389_v20  ;;  %v382_v24 = vsel %vm380_vm0, %v381_v18, %v379_v21  ;;  %v688_v27 = vpop.eup %687  ;;  %v426_v30 = vmul.f32 %v686_v22, %v1026_v45  ;;  %v1118_v36 = vadd.f32 1e-05, %v467_v26 }
 0x10a   : > { %v399_v29 = vadd.f32 %v1007_v34, %v382_v24  ;;  %v419_v31 = vmul.f32 %v688_v27, %v1031_v48  ;;  %697 = vrsqrt.f32 %v473_v35  ;;  %v437_v50 = vand.u32 2147483648, %v1064_v2 }
 0x10b   : > { %v428_v32 = vsel %vm427_vm2, %v1026_v45, %v426_v30  ;;  %405 = vst.msk [vmem:[%s1022_s4 + $0x18] sm:$0xff] %vm401_vm10, %v400_v23  ;;  %699 = vrsqrt.f32 %v1118_v36  ;;  %v444_v45 = vand.u32 2147483648, %v1062_v1  ;;  %vm483_vm11 = vcmp.eq.f32.partialorder %v1074_v9, inf }
 0x10c   : > { %404 = vst.msk [vmem:[%s1022_s4 + $0x10] sm:$0xff] %vm401_vm10, %v399_v29  ;;  %v431_v37 = vsel %vm429_vm3, %v430_v28, %v428_v32  ;;  %v421_v38 = vsel %vm420_vm4, %v1031_v48, %v419_v31  ;;  %v690_v41 = vpop.eup %689  ;;  %vm436_vm10 = vcmp.eq.f32.partialorder %v1064_v2, 0.0  ;;  %v486_v56 = vand.u32 2147483648, %v1074_v9 }
 0x10d   : > { %v454_v39 = vadd.f32 %v1007_v34, %v431_v37  ;;  %v424_v40 = vsel %vm422_vm5, %v423_v33, %v421_v38  ;;  %v440_v43 = vmul.f32 %v690_v41, %v1062_v1  ;;  %v692_v44 = vpop.eup %691  ;;  %vm485_vm12 = vcmp.eq.f32.partialorder %v1074_v9, 0.0 }
 0x10e   : > { %v453_v42 = vadd.f32 %v1007_v34, %v424_v40  ;;  %v433_v47 = vmul.f32 %v692_v44, %v1064_v2  ;;  %vm476_vm13 = vcmp.eq.f32.partialorder %v1094_v19, inf  ;;  %v479_v61 = vand.u32 2147483648, %v1094_v19 }
 0x10f   : > { %v442_v46 = vsel %vm441_vm7, %v1062_v1, %v440_v43  ;;  %459 = vst.msk [vmem:[%s1022_s4 + $0x8] sm:$0xff] %vm457_vm6, %v454_v39  ;;  %vm478_vm14 = vcmp.eq.f32.partialorder %v1094_v19, 0.0  ;;  %vm513_vm15 = vcmask 31768   ;;  %vm497_vm1 = vcmp.eq.f32.partialorder %v473_v35, inf }
 0x110   : > { %458 = vst.msk [vmem:[%s1022_s4] sm:$0xff] %vm457_vm6, %v453_v42  ;;  %v694_v48 = vpop.eup %693  ;;  %v445_v49 = vsel %vm443_vm8, %v444_v45, %v442_v46  ;;  %v435_v51 = vsel %vm434_vm9, %v1064_v2, %v433_v47  ;;  %v500_v5 = vand.u32 2147483648, %v473_v35  ;;  %vm499_vm0 = vcmp.eq.f32.partialorder %v473_v35, 0.0 }
 0x111   : > { %v482_v52 = vmul.f32 %v694_v48, %v1074_v9  ;;  %v696_v53 = vpop.eup %695  ;;  %v456_v54 = vadd.f32 %v1007_v34, %v445_v49  ;;  %v438_v55 = vsel %vm436_vm10, %v437_v50, %v435_v51  ;;  %vm490_vm2 = vcmp.eq.f32.partialorder %v1118_v36, inf }
 0x112   : > { %v455_v57 = vadd.f32 %v1007_v34, %v438_v55  ;;  %v475_v59 = vmul.f32 %v696_v53, %v1094_v19  ;;  %v493_v8 = vand.u32 2147483648, %v1118_v36  ;;  %vm492_vm3 = vcmp.eq.f32.partialorder %v1118_v36, 0.0 }
 0x113   : > { %v484_v58 = vsel %vm483_vm11, %v1074_v9, %v482_v52  ;;  %461 = vst.msk [vmem:[%s1022_s4 + $0x18] sm:$0xff] %vm457_vm6, %v456_v54 }
 0x114   : > { %v487_v60 = vsel %vm485_vm12, %v486_v56, %v484_v58  ;;  %v698_v62 = vpop.eup %697  ;;  %460 = vst.msk [vmem:[%s1022_s4 + $0x10] sm:$0xff] %vm457_vm6, %v455_v57  ;;  %v477_v63 = vsel %vm476_vm13, %v1094_v19, %v475_v59 }
 0x115   : > { %v700_v0 = vpop.eup %699  ;;  %v510_v1 = vadd.f32 %v1007_v34, %v487_v60  ;;  %v480_v2 = vsel %vm478_vm14, %v479_v61, %v477_v63  ;;  %v496_v3 = vmul.f32 %v698_v62, %v473_v35 }
 0x116   : > { %v509_v4 = vadd.f32 %v1007_v34, %v480_v2  ;;  %v489_v6 = vmul.f32 %v700_v0, %v1118_v36 }
 0x117   : > { %v498_v7 = vsel %vm497_vm1, %v473_v35, %v496_v3  ;;  %515 = vst.msk [vmem:[%s1022_s4 + $0x8] sm:$0xff] %vm513_vm15, %v510_v1 }
 0x118   : > { %v501_v9 = vsel %vm499_vm0, %v500_v5, %v498_v7  ;;  %514 = vst.msk [vmem:[%s1022_s4] sm:$0xff] %vm513_vm15, %v509_v4  ;;  %v491_v10 = vsel %vm490_vm2, %v1118_v36, %v489_v6 }
 0x119   : > { %v512_v11 = vadd.f32 %v1007_v34, %v501_v9  ;;  %v494_v12 = vsel %vm492_vm3, %v493_v8, %v491_v10 }
 0x11a   : > { %v511_v13 = vadd.f32 %v1007_v34, %v494_v12 }
 0x11b   : > { %517 = vst.msk [vmem:[%s1022_s4 + $0x18] sm:$0xff] %vm513_vm15, %v512_v11 }
 0x11c   : > { %516 = vst.msk [vmem:[%s1022_s4 + $0x10] sm:$0xff] %vm513_vm15, %v511_v13 }
 0x11d PF: > { %p14_p3 = scmp.ge.s32.totalorder %s843_s17, 4   ;;  %s1206_s12 = smov %s789_s13 }
 0x11e   : > { %s1207_s13 = smov %s793_s14  ;;  %s1208_s14 = smov %s853_s20 }
 0x11f   : > { %s1209_s15 = smov %s843_s17  ;;  %16 = sbr.rel (!%p14_p3) target bundleno = 4 (0x4), region = 76 }
 0x126   :  { %540 = vsyncpa [#allocation3], 1 }
 0x127   :  { %542 = vsyncpa [#allocation3 + $0x1], 1 }
 0x128   :  { %543 = vsyncpa [#allocation5], 1 }

</bundles_post_ra>
